<compile_context>
chip_gen: v7x
topology: tpu7x:2x2x1
jax: 0.10.0
libtpu: 0.0.40
codegen_flags: <defaults>
</compile_context>

<pallas_src>
import functools

import jax
import jax.numpy as jnp
from jax.experimental import pallas as pl
from jax.experimental.pallas import tpu as pltpu


def _round_up(x, m):
    return (x + m - 1) // m * m


def _stedina_kernel(theta_ref, know_ref, sg_ref, out_ref, *, max_slip, max_guess, k_dim):
    # theta_ref: (TB, K) int8 in {0,1}  -- STE sign of theta_emb[user], precomputed.
    # know_ref : (TB, K) caller dtype   -- knowledge mask, cast in-register.
    # sg_ref   : (TB, 2) f32            -- col 0 = slip logit, col 1 = guess logit.
    theta = theta_ref[...].astype(jnp.float32)
    k = know_ref[...].astype(jnp.float32)

    # mask_theta = (k == 0) + (k == 1) * theta  (exact reference semantics; values in {0,1})
    mask = (k == 0.0).astype(jnp.float32) + (k == 1.0).astype(jnp.float32) * theta

    # n = prod((mask + 1) / 2, axis=-1): every factor is 0.5 (mask==0) or 1 (mask==1),
    # so n == 2 ** -(count of zeros) == exp2(sum(mask) - K).  One cross-lane reduce
    # plus one EUP op instead of a product reduction.
    m = jnp.float32(k_dim) - jnp.sum(mask, axis=-1, keepdims=True)          # (TB, 1)
    n = jnp.exp2(-m)                                                         # (TB, 1)

    sg = sg_ref[...]
    slip = max_slip / (1.0 + jnp.exp(-sg[:, 0:1]))                           # (TB, 1)
    guess = max_guess / (1.0 + jnp.exp(-sg[:, 1:2]))                         # (TB, 1)

    # (1 - slip) ** n * guess ** (1 - n)  ==  guess * ((1 - slip) / guess) ** n
    out_ref[...] = guess * jnp.exp(n * jnp.log((1.0 - slip) / guess))


def stedina_forward(user, item, knowledge, theta_table, slip_table, guess_table,
                    max_slip=0.4, max_guess=0.4, block_rows=8192):
    B, K = knowledge.shape

    # STE sign taken once on the tiny (user_num, K) table, gathered as int8.
    theta_sign = (theta_table > 0).astype(jnp.int8)[user]                   # (B, K) int8
    slip_logit = slip_table[item, 0].astype(jnp.float32)                    # (B,)
    guess_logit = guess_table[item, 0].astype(jnp.float32)                  # (B,)
    sg = jnp.stack([slip_logit, guess_logit], axis=1)                       # (B, 2) slab

    # knowledge is NOT padded or re-cast in the wrapper (no extra HBM pass); the kernel
    # casts in-register, so any caller dtype (f32 / int8 / ...) keeps exact semantics.
    if knowledge.dtype == jnp.bool_:
        knowledge = knowledge.astype(jnp.int8)

    # --- row tiling --------------------------------------------------------------
    # VMEM budget per row (double-buffered): theta int8 + knowledge + the lane-padded
    # narrow sg (2 cols) and out (1 col) f32 blocks.  Keep total under ~24 MiB so the
    # tile is safe on every generation (v7x scoped default 32 MiB / 64 MiB physical).
    lane_pad = _round_up(K, 128)
    know_bytes = knowledge.dtype.itemsize
    per_row_vmem = 2 * (lane_pad * 1 + lane_pad * know_bytes + 128 * 4 + 128 * 4)
    vmem_budget = 24 << 20
    tb_vmem = max(8, (vmem_budget // per_row_vmem) // 8 * 8)
    # >= 2 grid steps whenever the batch allows it (v7x: two TensorCores share the grid).
    tb_half = max(8, _round_up(pl.cdiv(B, 2), 8))
    tb = max(8, min(block_rows, tb_vmem, tb_half) // 8 * 8)
    b_pad = _round_up(B, tb)

    if b_pad != B:
        pad = b_pad - B
        theta_sign = jnp.pad(theta_sign, ((0, pad), (0, 0)))
        knowledge = jnp.pad(knowledge, ((0, pad), (0, 0)))
        sg = jnp.pad(sg, ((0, pad), (0, 0)))

    kernel = functools.partial(_stedina_kernel,
                               max_slip=float(max_slip),
                               max_guess=float(max_guess),
                               k_dim=K)
    out = pl.pallas_call(
        kernel,
        out_shape=jax.ShapeDtypeStruct((b_pad, 1), jnp.float32),
        grid=(b_pad // tb,),
        in_specs=[pl.BlockSpec((tb, K), lambda i: (i, 0)),   # theta sign, int8
                  pl.BlockSpec((tb, K), lambda i: (i, 0)),   # knowledge
                  pl.BlockSpec((tb, 2), lambda i: (i, 0))],  # packed slip/guess logits
        out_specs=pl.BlockSpec((tb, 1), lambda i: (i, 0)),
        compiler_params=pltpu.CompilerParams(
            dimension_semantics=("parallel",),
            vmem_limit_bytes=32 << 20),
    )(theta_sign, knowledge, sg)
    return out[:B, 0]


def stedina_ref(user, item, knowledge, theta_table, slip_table, guess_table,
                max_slip=0.4, max_guess=0.4):
    # Pure-JAX mirror of the PyTorch forward, for sanity checking.
    theta = (theta_table[user] > 0).astype(jnp.float32)
    slip = jax.nn.sigmoid(slip_table[item, 0]) * max_slip
    guess = jax.nn.sigmoid(guess_table[item, 0]) * max_guess
    knowledge = knowledge.astype(jnp.float32)
    mask_theta = ((knowledge == 0).astype(jnp.float32)
                  + (knowledge == 1).astype(jnp.float32) * theta)
    n = jnp.prod((mask_theta + 1.0) / 2.0, axis=-1)
    return (1.0 - slip) ** n * guess ** (1.0 - n)


if __name__ == "__main__":
    key = jax.random.PRNGKey(0)
    ks = jax.random.split(key, 6)

    user_num, item_num, hidden_dim, batch = 10, 20, 32, 8

    # Module parameters (embedding tables).
    theta_table = jax.random.normal(ks[0], (user_num, hidden_dim), jnp.float32)
    slip_table = jax.random.normal(ks[1], (item_num, 1), jnp.float32)
    guess_table = jax.random.normal(ks[2], (item_num, 1), jnp.float32)

    # Forward inputs.
    user = jax.random.randint(ks[3], (batch,), 0, user_num)
    item = jax.random.randint(ks[4], (batch,), 0, item_num)
    knowledge = (jax.random.uniform(ks[5], (batch, hidden_dim)) > 0.5).astype(jnp.float32)

    out = stedina_forward(user, item, knowledge, theta_table, slip_table, guess_table,
                          max_slip=0.4, max_guess=0.4)
    jax.block_until_ready(out)

    ref = stedina_ref(user, item, knowledge, theta_table, slip_table, guess_table,
                      max_slip=0.4, max_guess=0.4)
    assert out.shape == (batch,), out.shape
    assert jnp.allclose(out, ref, rtol=1e-5, atol=1e-6), (out, ref)

    print("KERNEL_OK")
</pallas_src>

<mosaic_0001>
module attributes {stable_mosaic.version = 11 : i64} {
  func.func @_stedina_kernel(%arg0: i32, %arg1: memref<8x32xi8, #tpu.memory_space<vmem>>, %arg2: memref<8x32xf32, #tpu.memory_space<vmem>>, %arg3: memref<8x2xf32, #tpu.memory_space<vmem>>, %arg4: memref<8x1xf32, #tpu.memory_space<vmem>>) attributes {dimension_semantics = [#tpu.dimension_semantics<parallel>], iteration_bounds = array<i64: 1>, scalar_prefetch = 0 : i64, scratch_operands = 0 : i64, tpu.core_type = #tpu.core_type<tc>, window_params = [{transform_indices = @transform_0, window_bounds = array<i64: 8, 32>}, {transform_indices = @transform_1, window_bounds = array<i64: 8, 32>}, {transform_indices = @transform_2, window_bounds = array<i64: 8, 2>}, {transform_indices = @transform_3, window_bounds = array<i64: 8, 1>}]} {
    %c0 = arith.constant 0 : index
    %c0_0 = arith.constant 0 : index
    %0 = vector.load %arg1[%c0, %c0_0] : memref<8x32xi8, #tpu.memory_space<vmem>>, vector<8x32xi8>
    %1 = arith.sitofp %0 : vector<8x32xi8> to vector<8x32xf32>
    %c0_1 = arith.constant 0 : index
    %c0_2 = arith.constant 0 : index
    %2 = vector.load %arg2[%c0_1, %c0_2] : memref<8x32xf32, #tpu.memory_space<vmem>>, vector<8x32xf32>
    %cst = arith.constant 0.000000e+00 : f32
    %3 = vector.broadcast %cst : f32 to vector<8x32xf32>
    %4 = arith.cmpf oeq, %2, %3 : vector<8x32xf32>
    %5 = arith.extui %4 : vector<8x32xi1> to vector<8x32xi32>
    %6 = arith.sitofp %5 : vector<8x32xi32> to vector<8x32xf32>
    %cst_3 = arith.constant 1.000000e+00 : f32
    %7 = vector.broadcast %cst_3 : f32 to vector<8x32xf32>
    %8 = arith.cmpf oeq, %2, %7 : vector<8x32xf32>
    %9 = arith.extui %8 : vector<8x32xi1> to vector<8x32xi32>
    %10 = arith.sitofp %9 : vector<8x32xi32> to vector<8x32xf32>
    %11 = arith.mulf %10, %1 : vector<8x32xf32>
    %12 = arith.addf %6, %11 : vector<8x32xf32>
    %cst_4 = arith.constant dense<0.000000e+00> : vector<8xf32>
    %13 = vector.multi_reduction <add>, %12, %cst_4 [1] : vector<8x32xf32> to vector<8xf32>
    %14 = vector.shape_cast %13 : vector<8xf32> to vector<8x1xf32>
    %cst_5 = arith.constant 3.200000e+01 : f32
    %15 = vector.broadcast %cst_5 : f32 to vector<8x1xf32>
    %16 = arith.subf %15, %14 : vector<8x1xf32>
    %cst_6 = arith.constant 0.000000e+00 : f32
    %17 = vector.broadcast %cst_6 : f32 to vector<8x1xf32>
    %18 = arith.subf %17, %16 : vector<8x1xf32>
    %19 = math.exp2 %18 : vector<8x1xf32>
    %c0_7 = arith.constant 0 : index
    %c0_8 = arith.constant 0 : index
    %20 = vector.load %arg3[%c0_7, %c0_8] : memref<8x2xf32, #tpu.memory_space<vmem>>, vector<8x2xf32>
    %21 = vector.extract_strided_slice %20 {offsets = [0, 0], sizes = [8, 1], strides = [1, 1]} : vector<8x2xf32> to vector<8x1xf32>
    %cst_9 = arith.constant 0.000000e+00 : f32
    %22 = vector.broadcast %cst_9 : f32 to vector<8x1xf32>
    %23 = arith.subf %22, %21 : vector<8x1xf32>
    %24 = math.exp %23 : vector<8x1xf32>
    %cst_10 = arith.constant 1.000000e+00 : f32
    %25 = vector.broadcast %cst_10 : f32 to vector<8x1xf32>
    %26 = arith.addf %25, %24 : vector<8x1xf32>
    %cst_11 = arith.constant 4.000000e-01 : f32
    %27 = vector.broadcast %cst_11 : f32 to vector<8x1xf32>
    %28 = arith.divf %27, %26 : vector<8x1xf32>
    %29 = vector.extract_strided_slice %20 {offsets = [0, 1], sizes = [8, 1], strides = [1, 1]} : vector<8x2xf32> to vector<8x1xf32>
    %cst_12 = arith.constant 0.000000e+00 : f32
    %30 = vector.broadcast %cst_12 : f32 to vector<8x1xf32>
    %31 = arith.subf %30, %29 : vector<8x1xf32>
    %32 = math.exp %31 : vector<8x1xf32>
    %cst_13 = arith.constant 1.000000e+00 : f32
    %33 = vector.broadcast %cst_13 : f32 to vector<8x1xf32>
    %34 = arith.addf %33, %32 : vector<8x1xf32>
    %cst_14 = arith.constant 4.000000e-01 : f32
    %35 = vector.broadcast %cst_14 : f32 to vector<8x1xf32>
    %36 = arith.divf %35, %34 : vector<8x1xf32>
    %cst_15 = arith.constant 1.000000e+00 : f32
    %37 = vector.broadcast %cst_15 : f32 to vector<8x1xf32>
    %38 = arith.subf %37, %28 : vector<8x1xf32>
    %39 = arith.divf %38, %36 : vector<8x1xf32>
    %40 = math.log %39 : vector<8x1xf32>
    %41 = arith.mulf %19, %40 : vector<8x1xf32>
    %42 = math.exp %41 : vector<8x1xf32>
    %43 = arith.mulf %36, %42 : vector<8x1xf32>
    %c0_16 = arith.constant 0 : index
    %c0_17 = arith.constant 0 : index
    %44 = vector.load %arg4[%c0_16, %c0_17] : memref<8x1xf32, #tpu.memory_space<vmem>>, vector<8x1xf32>
    tpu.vector_store %arg4[%c0_16, %c0_17], %43 {strides = array<i32>} : memref<8x1xf32, #tpu.memory_space<vmem>>, vector<8x1xf32>,
    return
  }
  func.func @transform_0(%arg0: i32) -> (i32, i32) {
    %c0_i32 = arith.constant 0 : i32
    %c0_i32_0 = arith.constant 0 : i32
    return %arg0, %c0_i32 : i32, i32
  }
  func.func @transform_1(%arg0: i32) -> (i32, i32) {
    %c0_i32 = arith.constant 0 : i32
    %c0_i32_0 = arith.constant 0 : i32
    return %arg0, %c0_i32 : i32, i32
  }
  func.func @transform_2(%arg0: i32) -> (i32, i32) {
    %c0_i32 = arith.constant 0 : i32
    %c0_i32_0 = arith.constant 0 : i32
    return %arg0, %c0_i32 : i32, i32
  }
  func.func @transform_3(%arg0: i32) -> (i32, i32) {
    %c0_i32 = arith.constant 0 : i32
    %c0_i32_0 = arith.constant 0 : i32
    return %arg0, %c0_i32 : i32, i32
  }
}

</mosaic_0001>

<bundles_post_ra>
// kernel: tpu_custom_call.1
= control target key start
LH: loop header
LB: loop body
LE: loop exit
PB: predicated region body
PF: predicated region fallthrough
CT: control target
= control target key end

     0   :  { %v84_v5 = vmov 0.0   ;;  %vm26_vm2 = vcmask 261120   ;;  %vm61_vm3 = vcmask 7168   ;;  %s119_s0 = inlined_call_operand.vmem [shape: s8[8,32], index: 0, kind: input, shape index: {}]   ;;  %s120_s1 = inlined_call_operand.vmem [shape: f32[8,32], index: 1, kind: input, shape index: {}]   ;;  %s121_s2 = inlined_call_operand.vmem [shape: f32[8,2], index: 2, kind: input, shape index: {}]   ;;  %s122_s3 = inlined_call_operand.vmem [shape: f32[8,1], index: 3, kind: output, shape index: {}]  }
   0x1   :  { %v14_v0 = vld [vmem:[%s119_s0] sm:$0x3]  ;;  %s85_s0 = smov 127  }
   0x2   :  { %v17_v1 = vld [vmem:[%s120_s1] sm:$0xff]  ;;  %v15_v3 = vunpack.c.0.s8 %v14_v0  ;;  %s86_s1 = smov 1  }
   0x3   :  { %v33_v2 = vld [vmem:[%s121_s2] sm:$0xff]  ;;  %vm18_vm0 = vcmp.eq.f32.partialorder %v17_v1, 0.0  ;;  %vm21_vm1 = vcmp.eq.f32.partialorder %v17_v1, 1.0 }
   0x4   :  { %v34_v4 = vsub.f32 0.0, %v33_v2  ;;  %v68_v6 = vsel %vm21_vm1, 1.0, %v84_v5  ;;  %v16_v7 = vcvt.s32.f32 %v15_v3  ;;  %v67_v9 = vsel %vm18_vm0, 1.0, %v84_v5 }
   0x6   :  { %v35_v8 = vmul.f32 1.442695, %v34_v4  ;;  %v24_v10 = vmul.f32 %v68_v6, %v16_v7 }
   0x8   :  { %72 = vpow2.f32 %v35_v8  ;;  %v25_v11 = vadd.f32 %v67_v9, %v24_v10 }
   0xa   :  { %v27_v12 = vsel %vm26_vm2, %v25_v11, 0.0 }
   0xb   :  { %28 = vadd.xlane.f32.xlu0 %v27_v12 }
  0x12   :  { %v73_v13 = vpop.eup %72 }
  0x13   :  { %v37_v14 = vadd.f32 1.0, %v73_v13 }
  0x15   :  { %74 = vrcp.f32 %v37_v14 }
  0x1f   :  { %v75_v15 = vpop.eup %74 }
  0x20   :  { %v39_v16 = vmul.f32 0.4, %v75_v15 }
  0x22   :  { %42 = vrot.lane.b32.xlu0 %v39_v16, %s85_s0  ;;  %v40_v19 = vsub.f32 1.0, %v39_v16 }
  0x98   :  { %v29_v17 = vpop.xlane.xlu0 %28 }
  0x99   :  { %v30_v20 = vsub.f32 32.0, %v29_v17 }
  0x9b   :  { %v31_v22 = vsub.f32 0.0, %v30_v20 }
  0x9c   :  { %v43_v18 = vpop.permute.xlu0 %42 }
  0x9d   :  { %76 = vrcp.f32 %v43_v18 }
  0xa7   :  { %v77_v21 = vpop.eup %76 }
  0xa8   :  { %v46_v23 = vmul.f32 %v77_v21, %v40_v19 }
  0xaa   :  { %78 = vlog2.f32 %v46_v23 }
  0xab   :  { %80 = vpow2.f32 %v31_v22 }
  0xb4   :  { %v79_v24 = vpop.eup %78 }
  0xb5   :  { %v48_v25 = vmul.f32 0.6931472, %v79_v24  ;;  %v81_v26 = vpop.eup %80 }
  0xb7   :  { %v49_v27 = vmul.f32 %v81_v26, %v48_v25 }
  0xb9   :  { %v50_v28 = vmul.f32 1.442695, %v49_v27 }
  0xbb   :  { %82 = vpow2.f32 %v50_v28 }
  0xc5   :  { %v83_v29 = vpop.eup %82 }
  0xc6   :  { %53 = vrot.lane.b32.xlu1 %v83_v29, %s86_s1 }
 0x138   :  { %v54_v30 = vpop.permute.xlu1 %53 }
 0x139   :  { %v56_v31 = vmul.f32 %v54_v30, %v39_v16 }
 0x13b   :  { %58 = vrot.lane.b32.xlu1 %v56_v31, %s85_s0 }
 0x1ad   :  { %v59_v32 = vpop.permute.xlu1 %58 }
 0x1ae   :  { %62 = vst.msk [vmem:[%s122_s3] sm:$0xff] %vm61_vm3, %v59_v32 }

</bundles_post_ra>
